<compile_context>
chip_gen: v7x
topology: tpu7x:2x2x1
jax: 0.10.0
libtpu: 0.0.40
codegen_flags: <defaults>
</compile_context>

<pallas_src>
from functools import partial

import jax
import jax.numpy as jnp
from jax import lax
from jax.experimental import pallas as pl
from jax.experimental.pallas import tpu as pltpu


def _gcn_kernel(x_ref, a_ref, w_ref, b_ref, o_ref):
    # x_ref: (1, G, N, F)  G (b,t)-slices handled by this grid step
    # a_ref: (N, N)        normalized adjacency (shared across the grid)
    # w_ref: (F, H)        shared GCN weight (no block-diagonal expansion)
    # b_ref: (1, H)        bias
    # o_ref: (1, G, N, H)  out[0, g] = A @ X_g @ W + b
    G = x_ref.shape[1]
    a = a_ref[...]
    w = w_ref[...]
    b = b_ref[...]
    # Static unroll: G is small (B*T / num_cores); the 2*G tiny MXU pushes are
    # free (vex slot nowhere near saturated), and this removes all host-side
    # relayout work.  Matmuls run at default (bf16-pass) MXU precision with
    # f32 accumulation; pass precision=HIGHEST here if bit-closer parity with
    # a CPU f32 reference is required.
    for g in range(G):
        z = jnp.dot(a, x_ref[0, g], preferred_element_type=jnp.float32)   # (N, F)
        y = jnp.dot(z, w, preferred_element_type=jnp.float32)             # (N, H)
        o_ref[0, g] = (y + b).astype(o_ref.dtype)


@partial(jax.jit, static_argnames=("num_cores",))
def spatial_gcn_forward(x, a_norm, weight, bias, *, num_cores=1):
    """x: (B, T, N, F) float32 -> (B, T, N, H) float32."""
    B, T, N, F = x.shape
    H = weight.shape[1]
    BT = B * T

    # One grid step per TensorCore: P=1 on v5e/v6e (single TC, extra steps are
    # pure overhead), P=2 on v7x/megacore so "parallel" shards across cores.
    P = num_cores if (num_cores > 1 and BT % num_cores == 0) else 1
    G = BT // P

    # Pure leading-dim reshape (no transpose, no data movement under jit).
    x_g = x.reshape(P, G, N, F)
    bias2d = bias.reshape(1, H)

    flops = 2 * BT * (N * N * F + N * F * H)
    bytes_accessed = 4 * (BT * N * F + N * N + F * H + H + BT * N * H)

    out = pl.pallas_call(
        _gcn_kernel,
        out_shape=jax.ShapeDtypeStruct((P, G, N, H), jnp.float32),
        grid_spec=pltpu.PrefetchScalarGridSpec(
            num_scalar_prefetch=0,
            grid=(P,),
            in_specs=[
                pl.BlockSpec((1, G, N, F), lambda i: (i, 0, 0, 0)),  # per-step slab
                pl.BlockSpec((N, N), lambda i: (0, 0)),              # shared A_norm
                pl.BlockSpec((F, H), lambda i: (0, 0)),              # shared weight
                pl.BlockSpec((1, H), lambda i: (0, 0)),              # shared bias
            ],
            out_specs=pl.BlockSpec((1, G, N, H), lambda i: (i, 0, 0, 0)),
        ),
        compiler_params=pltpu.CompilerParams(
            dimension_semantics=("parallel",)),
        cost_estimate=pl.CostEstimate(
            flops=flops, transcendentals=0, bytes_accessed=bytes_accessed),
    )(x_g, a_norm, weight, bias2d)

    return out.reshape(B, T, N, H)


def _tensorcores_per_chip():
    """TensorCores one 'parallel' pallas grid axis can shard over on this chip."""
    try:
        kind = jax.devices()[0].device_kind.lower()
    except Exception:
        return 1
    # v4/v5p (megacore) and v7x have 2 TensorCores per chip; v5e/v6e have 1.
    if any(tag in kind for tag in ("v4", "v5p", "v7")):
        return 2
    return 1


def build_gcn_norm_adjacency(edge_index, num_nodes):
    """Dense D^-1/2 (A + I) D^-1/2 matching torch_geometric GCNConv defaults.

    edge_index: (2, E) int32 with rows (source, target). A_norm[dst, src] holds
    the edge coefficient so out = A_norm @ X aggregates messages at targets.
    Self-loops are only added for nodes that do not already have one
    (add_remaining_self_loops semantics); duplicate edges accumulate like
    PyG's scatter-add.
    """
    src, dst = edge_index[0], edge_index[1]
    adj = jnp.zeros((num_nodes, num_nodes), jnp.float32)
    adj = adj.at[dst, src].add(1.0)
    diag = jnp.diagonal(adj)
    adj = adj + jnp.diag(jnp.where(diag > 0, 0.0, 1.0))     # remaining self-loops
    deg = adj.sum(axis=1)                                    # in-degree incl. loop
    dinv = jnp.where(deg > 0, 1.0 / jnp.sqrt(deg), 0.0)
    return dinv[:, None] * adj * dinv[None, :]


def init_gcn_params(key, in_channels, hidden_dim):
    # Glorot-uniform weight, zero bias (GCNConv defaults), deterministic seed.
    limit = (6.0 / (in_channels + hidden_dim)) ** 0.5
    weight = jax.random.uniform(
        key, (in_channels, hidden_dim), jnp.float32, minval=-limit, maxval=limit)
    bias = jnp.zeros((hidden_dim,), jnp.float32)
    return weight, bias


if __name__ == "__main__":
    B, T, N, F, H = 2, 4, 16, 8, 32

    key = jax.random.PRNGKey(0)
    k_x, k_w = jax.random.split(key)

    x = jax.random.normal(k_x, (B, T, N, F), jnp.float32)

    # Deterministic ring graph (bidirectional) over N nodes.
    nodes = jnp.arange(N, dtype=jnp.int32)
    nxt = (nodes + 1) % N
    edge_index = jnp.stack(
        [jnp.concatenate([nodes, nxt]), jnp.concatenate([nxt, nodes])], axis=0)

    a_norm = build_gcn_norm_adjacency(edge_index, N)
    weight, bias = init_gcn_params(k_w, F, H)

    num_cores = _tensorcores_per_chip()
    out = spatial_gcn_forward(x, a_norm, weight, bias, num_cores=num_cores)
    out = jax.block_until_ready(out)

    # Pure-JAX f32 (HIGHEST precision) reference. The kernel's matmuls run at
    # default (single bf16-pass) MXU precision, so allow ~1e-2 slack.
    ref_z = jnp.einsum("nm,btmf->btnf", a_norm, x,
                       precision=lax.Precision.HIGHEST)
    ref = jnp.einsum("btnf,fh->btnh", ref_z, weight,
                     precision=lax.Precision.HIGHEST) + bias

    assert out.shape == (B, T, N, H)
    max_err = float(jnp.abs(out - ref).max())
    assert jnp.allclose(out, ref, atol=2e-2, rtol=2e-2), max_err

    print("KERNEL_OK")
</pallas_src>

<mosaic_0001>
module attributes {stable_mosaic.version = 11 : i64} {
  func.func @_gcn_kernel(%arg0: i32, %arg1: memref<1x8x16x8xf32, #tpu.memory_space<vmem>>, %arg2: memref<16x16xf32, #tpu.memory_space<vmem>>, %arg3: memref<8x32xf32, #tpu.memory_space<vmem>>, %arg4: memref<1x32xf32, #tpu.memory_space<vmem>>, %arg5: memref<1x8x16x32xf32, #tpu.memory_space<vmem>>) attributes {dimension_semantics = [#tpu.dimension_semantics<parallel>], iteration_bounds = array<i64: 1>, scalar_prefetch = 0 : i64, scratch_operands = 0 : i64, tpu.core_type = #tpu.core_type<tc>, window_params = [{transform_indices = @transform_0, window_bounds = array<i64: 1, 8, 16, 8>}, {pipeline_mode = #tpu.pipeline_mode<synchronous>, transform_indices = @transform_1, window_bounds = array<i64: 16, 16>}, {pipeline_mode = #tpu.pipeline_mode<synchronous>, transform_indices = @transform_2, window_bounds = array<i64: 8, 32>}, {pipeline_mode = #tpu.pipeline_mode<synchronous>, transform_indices = @transform_3, window_bounds = array<i64: 1, 32>}, {transform_indices = @transform_4, window_bounds = array<i64: 1, 8, 16, 32>}]} {
    %c0 = arith.constant 0 : index
    %c0_0 = arith.constant 0 : index
    %0 = vector.load %arg2[%c0, %c0_0] : memref<16x16xf32, #tpu.memory_space<vmem>>, vector<16x16xf32>
    %c0_1 = arith.constant 0 : index
    %c0_2 = arith.constant 0 : index
    %1 = vector.load %arg3[%c0_1, %c0_2] : memref<8x32xf32, #tpu.memory_space<vmem>>, vector<8x32xf32>
    %c0_3 = arith.constant 0 : index
    %c0_4 = arith.constant 0 : index
    %2 = vector.load %arg4[%c0_3, %c0_4] : memref<1x32xf32, #tpu.memory_space<vmem>>, vector<1x32xf32>
    %c0_5 = arith.constant 0 : index
    %c0_6 = arith.constant 0 : index
    %c0_7 = arith.constant 0 : index
    %c0_8 = arith.constant 0 : index
    %3 = vector.load %arg1[%c0_5, %c0_6, %c0_7, %c0_8] : memref<1x8x16x8xf32, #tpu.memory_space<vmem>>, vector<1x1x16x8xf32>
    %4 = vector.shape_cast %3 : vector<1x1x16x8xf32> to vector<16x8xf32>
    %cst = arith.constant dense<0.000000e+00> : vector<16x8xf32>
    %5 = tpu.matmul %0, %4, %cst {dimension_numbers = #tpu.dot_dimension_numbers<[1], [0], [0], [1], [0, 0, 1, 1], [], []>} : vector<16x16xf32>, vector<16x8xf32>, vector<16x8xf32> -> vector<16x8xf32>
    %cst_9 = arith.constant dense<0.000000e+00> : vector<16x32xf32>
    %6 = tpu.matmul %5, %1, %cst_9 {dimension_numbers = #tpu.dot_dimension_numbers<[1], [0], [0], [1], [0, 0, 1, 1], [], []>} : vector<16x8xf32>, vector<8x32xf32>, vector<16x32xf32> -> vector<16x32xf32>
    %7 = vector.broadcast %2 : vector<1x32xf32> to vector<16x32xf32>
    %8 = arith.addf %6, %7 : vector<16x32xf32>
    %c0_10 = arith.constant 0 : index
    %c0_11 = arith.constant 0 : index
    %c0_12 = arith.constant 0 : index
    %c0_13 = arith.constant 0 : index
    %9 = vector.load %arg5[%c0_10, %c0_11, %c0_12, %c0_13] : memref<1x8x16x32xf32, #tpu.memory_space<vmem>>, vector<1x1x16x32xf32>
    %10 = vector.shape_cast %9 : vector<1x1x16x32xf32> to vector<16x32xf32>
    %11 = vector.shape_cast %8 : vector<16x32xf32> to vector<1x1x16x32xf32>
    tpu.vector_store %arg5[%c0_10, %c0_11, %c0_12, %c0_13], %11 {strides = array<i32>} : memref<1x8x16x32xf32, #tpu.memory_space<vmem>>, vector<1x1x16x32xf32>,
    %c0_14 = arith.constant 0 : index
    %c1 = arith.constant 1 : index
    %c0_15 = arith.constant 0 : index
    %c0_16 = arith.constant 0 : index
    %12 = vector.load %arg1[%c0_14, %c1, %c0_15, %c0_16] : memref<1x8x16x8xf32, #tpu.memory_space<vmem>>, vector<1x1x16x8xf32>
    %13 = vector.shape_cast %12 : vector<1x1x16x8xf32> to vector<16x8xf32>
    %cst_17 = arith.constant dense<0.000000e+00> : vector<16x8xf32>
    %14 = tpu.matmul %0, %13, %cst_17 {dimension_numbers = #tpu.dot_dimension_numbers<[1], [0], [0], [1], [0, 0, 1, 1], [], []>} : vector<16x16xf32>, vector<16x8xf32>, vector<16x8xf32> -> vector<16x8xf32>
    %cst_18 = arith.constant dense<0.000000e+00> : vector<16x32xf32>
    %15 = tpu.matmul %14, %1, %cst_18 {dimension_numbers = #tpu.dot_dimension_numbers<[1], [0], [0], [1], [0, 0, 1, 1], [], []>} : vector<16x8xf32>, vector<8x32xf32>, vector<16x32xf32> -> vector<16x32xf32>
    %16 = vector.broadcast %2 : vector<1x32xf32> to vector<16x32xf32>
    %17 = arith.addf %15, %16 : vector<16x32xf32>
    %c0_19 = arith.constant 0 : index
    %c1_20 = arith.constant 1 : index
    %c0_21 = arith.constant 0 : index
    %c0_22 = arith.constant 0 : index
    %18 = vector.load %arg5[%c0_19, %c1_20, %c0_21, %c0_22] : memref<1x8x16x32xf32, #tpu.memory_space<vmem>>, vector<1x1x16x32xf32>
    %19 = vector.shape_cast %18 : vector<1x1x16x32xf32> to vector<16x32xf32>
    %20 = vector.shape_cast %17 : vector<16x32xf32> to vector<1x1x16x32xf32>
    tpu.vector_store %arg5[%c0_19, %c1_20, %c0_21, %c0_22], %20 {strides = array<i32>} : memref<1x8x16x32xf32, #tpu.memory_space<vmem>>, vector<1x1x16x32xf32>,
    %c0_23 = arith.constant 0 : index
    %c2 = arith.constant 2 : index
    %c0_24 = arith.constant 0 : index
    %c0_25 = arith.constant 0 : index
    %21 = vector.load %arg1[%c0_23, %c2, %c0_24, %c0_25] : memref<1x8x16x8xf32, #tpu.memory_space<vmem>>, vector<1x1x16x8xf32>
    %22 = vector.shape_cast %21 : vector<1x1x16x8xf32> to vector<16x8xf32>
    %cst_26 = arith.constant dense<0.000000e+00> : vector<16x8xf32>
    %23 = tpu.matmul %0, %22, %cst_26 {dimension_numbers = #tpu.dot_dimension_numbers<[1], [0], [0], [1], [0, 0, 1, 1], [], []>} : vector<16x16xf32>, vector<16x8xf32>, vector<16x8xf32> -> vector<16x8xf32>
    %cst_27 = arith.constant dense<0.000000e+00> : vector<16x32xf32>
    %24 = tpu.matmul %23, %1, %cst_27 {dimension_numbers = #tpu.dot_dimension_numbers<[1], [0], [0], [1], [0, 0, 1, 1], [], []>} : vector<16x8xf32>, vector<8x32xf32>, vector<16x32xf32> -> vector<16x32xf32>
    %25 = vector.broadcast %2 : vector<1x32xf32> to vector<16x32xf32>
    %26 = arith.addf %24, %25 : vector<16x32xf32>
    %c0_28 = arith.constant 0 : index
    %c2_29 = arith.constant 2 : index
    %c0_30 = arith.constant 0 : index
    %c0_31 = arith.constant 0 : index
    %27 = vector.load %arg5[%c0_28, %c2_29, %c0_30, %c0_31] : memref<1x8x16x32xf32, #tpu.memory_space<vmem>>, vector<1x1x16x32xf32>
    %28 = vector.shape_cast %27 : vector<1x1x16x32xf32> to vector<16x32xf32>
    %29 = vector.shape_cast %26 : vector<16x32xf32> to vector<1x1x16x32xf32>
    tpu.vector_store %arg5[%c0_28, %c2_29, %c0_30, %c0_31], %29 {strides = array<i32>} : memref<1x8x16x32xf32, #tpu.memory_space<vmem>>, vector<1x1x16x32xf32>,
    %c0_32 = arith.constant 0 : index
    %c3 = arith.constant 3 : index
    %c0_33 = arith.constant 0 : index
    %c0_34 = arith.constant 0 : index
    %30 = vector.load %arg1[%c0_32, %c3, %c0_33, %c0_34] : memref<1x8x16x8xf32, #tpu.memory_space<vmem>>, vector<1x1x16x8xf32>
    %31 = vector.shape_cast %30 : vector<1x1x16x8xf32> to vector<16x8xf32>
    %cst_35 = arith.constant dense<0.000000e+00> : vector<16x8xf32>
    %32 = tpu.matmul %0, %31, %cst_35 {dimension_numbers = #tpu.dot_dimension_numbers<[1], [0], [0], [1], [0, 0, 1, 1], [], []>} : vector<16x16xf32>, vector<16x8xf32>, vector<16x8xf32> -> vector<16x8xf32>
    %cst_36 = arith.constant dense<0.000000e+00> : vector<16x32xf32>
    %33 = tpu.matmul %32, %1, %cst_36 {dimension_numbers = #tpu.dot_dimension_numbers<[1], [0], [0], [1], [0, 0, 1, 1], [], []>} : vector<16x8xf32>, vector<8x32xf32>, vector<16x32xf32> -> vector<16x32xf32>
    %34 = vector.broadcast %2 : vector<1x32xf32> to vector<16x32xf32>
    %35 = arith.addf %33, %34 : vector<16x32xf32>
    %c0_37 = arith.constant 0 : index
    %c3_38 = arith.constant 3 : index
    %c0_39 = arith.constant 0 : index
    %c0_40 = arith.constant 0 : index
    %36 = vector.load %arg5[%c0_37, %c3_38, %c0_39, %c0_40] : memref<1x8x16x32xf32, #tpu.memory_space<vmem>>, vector<1x1x16x32xf32>
    %37 = vector.shape_cast %36 : vector<1x1x16x32xf32> to vector<16x32xf32>
    %38 = vector.shape_cast %35 : vector<16x32xf32> to vector<1x1x16x32xf32>
    tpu.vector_store %arg5[%c0_37, %c3_38, %c0_39, %c0_40], %38 {strides = array<i32>} : memref<1x8x16x32xf32, #tpu.memory_space<vmem>>, vector<1x1x16x32xf32>,
    %c0_41 = arith.constant 0 : index
    %c4 = arith.constant 4 : index
    %c0_42 = arith.constant 0 : index
    %c0_43 = arith.constant 0 : index
    %39 = vector.load %arg1[%c0_41, %c4, %c0_42, %c0_43] : memref<1x8x16x8xf32, #tpu.memory_space<vmem>>, vector<1x1x16x8xf32>
    %40 = vector.shape_cast %39 : vector<1x1x16x8xf32> to vector<16x8xf32>
    %cst_44 = arith.constant dense<0.000000e+00> : vector<16x8xf32>
    %41 = tpu.matmul %0, %40, %cst_44 {dimension_numbers = #tpu.dot_dimension_numbers<[1], [0], [0], [1], [0, 0, 1, 1], [], []>} : vector<16x16xf32>, vector<16x8xf32>, vector<16x8xf32> -> vector<16x8xf32>
    %cst_45 = arith.constant dense<0.000000e+00> : vector<16x32xf32>
    %42 = tpu.matmul %41, %1, %cst_45 {dimension_numbers = #tpu.dot_dimension_numbers<[1], [0], [0], [1], [0, 0, 1, 1], [], []>} : vector<16x8xf32>, vector<8x32xf32>, vector<16x32xf32> -> vector<16x32xf32>
    %43 = vector.broadcast %2 : vector<1x32xf32> to vector<16x32xf32>
    %44 = arith.addf %42, %43 : vector<16x32xf32>
    %c0_46 = arith.constant 0 : index
    %c4_47 = arith.constant 4 : index
    %c0_48 = arith.constant 0 : index
    %c0_49 = arith.constant 0 : index
    %45 = vector.load %arg5[%c0_46, %c4_47, %c0_48, %c0_49] : memref<1x8x16x32xf32, #tpu.memory_space<vmem>>, vector<1x1x16x32xf32>
    %46 = vector.shape_cast %45 : vector<1x1x16x32xf32> to vector<16x32xf32>
    %47 = vector.shape_cast %44 : vector<16x32xf32> to vector<1x1x16x32xf32>
    tpu.vector_store %arg5[%c0_46, %c4_47, %c0_48, %c0_49], %47 {strides = array<i32>} : memref<1x8x16x32xf32, #tpu.memory_space<vmem>>, vector<1x1x16x32xf32>,
    %c0_50 = arith.constant 0 : index
    %c5 = arith.constant 5 : index
    %c0_51 = arith.constant 0 : index
    %c0_52 = arith.constant 0 : index
    %48 = vector.load %arg1[%c0_50, %c5, %c0_51, %c0_52] : memref<1x8x16x8xf32, #tpu.memory_space<vmem>>, vector<1x1x16x8xf32>
    %49 = vector.shape_cast %48 : vector<1x1x16x8xf32> to vector<16x8xf32>
    %cst_53 = arith.constant dense<0.000000e+00> : vector<16x8xf32>
    %50 = tpu.matmul %0, %49, %cst_53 {dimension_numbers = #tpu.dot_dimension_numbers<[1], [0], [0], [1], [0, 0, 1, 1], [], []>} : vector<16x16xf32>, vector<16x8xf32>, vector<16x8xf32> -> vector<16x8xf32>
    %cst_54 = arith.constant dense<0.000000e+00> : vector<16x32xf32>
    %51 = tpu.matmul %50, %1, %cst_54 {dimension_numbers = #tpu.dot_dimension_numbers<[1], [0], [0], [1], [0, 0, 1, 1], [], []>} : vector<16x8xf32>, vector<8x32xf32>, vector<16x32xf32> -> vector<16x32xf32>
    %52 = vector.broadcast %2 : vector<1x32xf32> to vector<16x32xf32>
    %53 = arith.addf %51, %52 : vector<16x32xf32>
    %c0_55 = arith.constant 0 : index
    %c5_56 = arith.constant 5 : index
    %c0_57 = arith.constant 0 : index
    %c0_58 = arith.constant 0 : index
    %54 = vector.load %arg5[%c0_55, %c5_56, %c0_57, %c0_58] : memref<1x8x16x32xf32, #tpu.memory_space<vmem>>, vector<1x1x16x32xf32>
    %55 = vector.shape_cast %54 : vector<1x1x16x32xf32> to vector<16x32xf32>
    %56 = vector.shape_cast %53 : vector<16x32xf32> to vector<1x1x16x32xf32>
    tpu.vector_store %arg5[%c0_55, %c5_56, %c0_57, %c0_58], %56 {strides = array<i32>} : memref<1x8x16x32xf32, #tpu.memory_space<vmem>>, vector<1x1x16x32xf32>,
    %c0_59 = arith.constant 0 : index
    %c6 = arith.constant 6 : index
    %c0_60 = arith.constant 0 : index
    %c0_61 = arith.constant 0 : index
    %57 = vector.load %arg1[%c0_59, %c6, %c0_60, %c0_61] : memref<1x8x16x8xf32, #tpu.memory_space<vmem>>, vector<1x1x16x8xf32>
    %58 = vector.shape_cast %57 : vector<1x1x16x8xf32> to vector<16x8xf32>
    %cst_62 = arith.constant dense<0.000000e+00> : vector<16x8xf32>
    %59 = tpu.matmul %0, %58, %cst_62 {dimension_numbers = #tpu.dot_dimension_numbers<[1], [0], [0], [1], [0, 0, 1, 1], [], []>} : vector<16x16xf32>, vector<16x8xf32>, vector<16x8xf32> -> vector<16x8xf32>
    %cst_63 = arith.constant dense<0.000000e+00> : vector<16x32xf32>
    %60 = tpu.matmul %59, %1, %cst_63 {dimension_numbers = #tpu.dot_dimension_numbers<[1], [0], [0], [1], [0, 0, 1, 1], [], []>} : vector<16x8xf32>, vector<8x32xf32>, vector<16x32xf32> -> vector<16x32xf32>
    %61 = vector.broadcast %2 : vector<1x32xf32> to vector<16x32xf32>
    %62 = arith.addf %60, %61 : vector<16x32xf32>
    %c0_64 = arith.constant 0 : index
    %c6_65 = arith.constant 6 : index
    %c0_66 = arith.constant 0 : index
    %c0_67 = arith.constant 0 : index
    %63 = vector.load %arg5[%c0_64, %c6_65, %c0_66, %c0_67] : memref<1x8x16x32xf32, #tpu.memory_space<vmem>>, vector<1x1x16x32xf32>
    %64 = vector.shape_cast %63 : vector<1x1x16x32xf32> to vector<16x32xf32>
    %65 = vector.shape_cast %62 : vector<16x32xf32> to vector<1x1x16x32xf32>
    tpu.vector_store %arg5[%c0_64, %c6_65, %c0_66, %c0_67], %65 {strides = array<i32>} : memref<1x8x16x32xf32, #tpu.memory_space<vmem>>, vector<1x1x16x32xf32>,
    %c0_68 = arith.constant 0 : index
    %c7 = arith.constant 7 : index
    %c0_69 = arith.constant 0 : index
    %c0_70 = arith.constant 0 : index
    %66 = vector.load %arg1[%c0_68, %c7, %c0_69, %c0_70] : memref<1x8x16x8xf32, #tpu.memory_space<vmem>>, vector<1x1x16x8xf32>
    %67 = vector.shape_cast %66 : vector<1x1x16x8xf32> to vector<16x8xf32>
    %cst_71 = arith.constant dense<0.000000e+00> : vector<16x8xf32>
    %68 = tpu.matmul %0, %67, %cst_71 {dimension_numbers = #tpu.dot_dimension_numbers<[1], [0], [0], [1], [0, 0, 1, 1], [], []>} : vector<16x16xf32>, vector<16x8xf32>, vector<16x8xf32> -> vector<16x8xf32>
    %cst_72 = arith.constant dense<0.000000e+00> : vector<16x32xf32>
    %69 = tpu.matmul %68, %1, %cst_72 {dimension_numbers = #tpu.dot_dimension_numbers<[1], [0], [0], [1], [0, 0, 1, 1], [], []>} : vector<16x8xf32>, vector<8x32xf32>, vector<16x32xf32> -> vector<16x32xf32>
    %70 = vector.broadcast %2 : vector<1x32xf32> to vector<16x32xf32>
    %71 = arith.addf %69, %70 : vector<16x32xf32>
    %c0_73 = arith.constant 0 : index
    %c7_74 = arith.constant 7 : index
    %c0_75 = arith.constant 0 : index
    %c0_76 = arith.constant 0 : index
    %72 = vector.load %arg5[%c0_73, %c7_74, %c0_75, %c0_76] : memref<1x8x16x32xf32, #tpu.memory_space<vmem>>, vector<1x1x16x32xf32>
    %73 = vector.shape_cast %72 : vector<1x1x16x32xf32> to vector<16x32xf32>
    %74 = vector.shape_cast %71 : vector<16x32xf32> to vector<1x1x16x32xf32>
    tpu.vector_store %arg5[%c0_73, %c7_74, %c0_75, %c0_76], %74 {strides = array<i32>} : memref<1x8x16x32xf32, #tpu.memory_space<vmem>>, vector<1x1x16x32xf32>,
    return
  }
  func.func @transform_0(%arg0: i32) -> (i32, i32, i32, i32) {
    %c0_i32 = arith.constant 0 : i32
    %c0_i32_0 = arith.constant 0 : i32
    %c0_i32_1 = arith.constant 0 : i32
    %c0_i32_2 = arith.constant 0 : i32
    return %arg0, %c0_i32, %c0_i32_0, %c0_i32_1 : i32, i32, i32, i32
  }
  func.func @transform_1(%arg0: i32) -> (i32, i32) {
    %c0_i32 = arith.constant 0 : i32
    %c0_i32_0 = arith.constant 0 : i32
    %c0_i32_1 = arith.constant 0 : i32
    return %c0_i32, %c0_i32_0 : i32, i32
  }
  func.func @transform_2(%arg0: i32) -> (i32, i32) {
    %c0_i32 = arith.constant 0 : i32
    %c0_i32_0 = arith.constant 0 : i32
    %c0_i32_1 = arith.constant 0 : i32
    return %c0_i32, %c0_i32_0 : i32, i32
  }
  func.func @transform_3(%arg0: i32) -> (i32, i32) {
    %c0_i32 = arith.constant 0 : i32
    %c0_i32_0 = arith.constant 0 : i32
    %c0_i32_1 = arith.constant 0 : i32
    return %c0_i32, %c0_i32_0 : i32, i32
  }
  func.func @transform_4(%arg0: i32) -> (i32, i32, i32, i32) {
    %c0_i32 = arith.constant 0 : i32
    %c0_i32_0 = arith.constant 0 : i32
    %c0_i32_1 = arith.constant 0 : i32
    %c0_i32_2 = arith.constant 0 : i32
    return %arg0, %c0_i32, %c0_i32_0, %c0_i32_1 : i32, i32, i32, i32
  }
}

</mosaic_0001>

<bundles_post_ra>
// kernel: spatial_gcn_forward.1
= control target key start
LH: loop header
LB: loop body
LE: loop exit
PB: predicated region body
PF: predicated region fallthrough
CT: control target
= control target key end

     0   :  { %vm24_vm0 = vcmask 130048   ;;  %s1799_s0 = inlined_call_operand.vmem [shape: f32[1,8,16,8], index: 0, kind: input, shape index: {}]   ;;  %s1800_s1 = inlined_call_operand.vmem [shape: f32[16,16], index: 1, kind: input, shape index: {}]   ;;  %s1801_s2 = inlined_call_operand.vmem [shape: f32[8,32], index: 2, kind: input, shape index: {}]   ;;  %s1802_s3 = inlined_call_operand.vmem [shape: f32[1,32], index: 3, kind: input, shape index: {}]   ;;  %s1803_s4 = inlined_call_operand.hbm [shape: f32[1,8,16,32], index: 4, kind: output, shape index: {}]  }
   0x1   :  { %v22_v0 = vld [vmem:[%s1799_s0] sm:$0xff]  ;;  %v23_v1 = vld [vmem:[%s1799_s0 + $0x8] sm:$0xff] }
   0x2   :  { %v1642_v2 = vld [vmem:[%s1800_s1] sm:$0xff]  ;;  %v1546_v3 = vpack.c.bf16 %v23_v1, %v22_v0 }
   0x3   :  { %1454 = vmatprep.mubr.msk.f32.mxu0 %vm24_vm0, %v1642_v2 }
   0x4   :  { %9 = vsyncpa [#allocation3], 0  ;;  %1547 = vmatprep.subr.bf16.mxu0 %v1546_v3  ;;  %v19_v4 = vld [vmem:[%s1800_s1 + $0x8] sm:$0xff]  ;;  %v1653_v5 = vld [vmem:[%s1801_s2] sm:$0xff]  ;;  %vm112_vm1 = vcmask 64512   ;;  %vm194_vm2 = vcmask 261120  }
   0x5   :  { %1549 = vmatpush3.bf16.msra.mxu0 %v1546_v3  ;;  %v1352_v6 = vld [vmem:[%s1799_s0 + $0x10] sm:$0xff]  ;;  %v1353_v7 = vld [vmem:[%s1799_s0 + $0x18] sm:$0xff]  ;;  %1457 = vmatprep.subr.mxu1 %v1653_v5  ;;  %v1358_v9 = vld [vmem:[%s1799_s0 + $0x20] sm:$0xff] }
   0x6   :  { %v1550_v8 = vpack.c.bf16 %v1353_v7, %v1352_v6  ;;  %1469 = vmatprep.subr.mxu0 %v1653_v5  ;;  %1458 = vmatpush3.msra.mxu1 %v1653_v5  ;;  %v1359_v10 = vld [vmem:[%s1799_s0 + $0x28] sm:$0xff]  ;;  %v1364_v14 = vld [vmem:[%s1799_s0 + $0x30] sm:$0xff]  ;;  %v1365_v15 = vld [vmem:[%s1799_s0 + $0x38] sm:$0xff] }
   0x7   :  { %v1554_v13 = vpack.c.bf16 %v1359_v10, %v1358_v9  ;;  %v1558_v16 = vpack.c.bf16 %v1365_v15, %v1364_v14  ;;  %v1370_v17 = vld [vmem:[%s1799_s0 + $0x40] sm:$0xff]  ;;  %v1371_v18 = vld [vmem:[%s1799_s0 + $0x48] sm:$0xff]  ;;  %v1376_v20 = vld [vmem:[%s1799_s0 + $0x50] sm:$0xff] }
   0x8   :  { %1455 = vmatmul.mubr.msk.f32.vlgmr.msra.gmra.mrb[0].mxu0 %vm24_vm0, %v19_v4  ;;  %1551 = vmatprep.subr.bf16.mxu1 %v1550_v8  ;;  %v1562_v19 = vpack.c.bf16 %v1371_v18, %v1370_v17  ;;  %v1377_v21 = vld [vmem:[%s1799_s0 + $0x58] sm:$0xff]  ;;  %v1382_v23 = vld [vmem:[%s1799_s0 + $0x60] sm:$0xff]  ;;  %v1383_v24 = vld [vmem:[%s1799_s0 + $0x68] sm:$0xff] }
   0x9   :  { %1470 = vmatpush3.msra.mxu0 %v1653_v5  ;;  %v1566_v22 = vpack.c.bf16 %v1377_v21, %v1376_v20  ;;  %v1570_v25 = vpack.c.bf16 %v1383_v24, %v1382_v23  ;;  %v1388_v26 = vld [vmem:[%s1799_s0 + $0x70] sm:$0xff]  ;;  %v1389_v27 = vld [vmem:[%s1799_s0 + $0x78] sm:$0xff]  ;;  %v1728_v29 = vld [vmem:[%s1802_s3] ss:$0 sm:$0xff]  ;;  %s1605_s3 = smov [#allocation2]  }
   0xa   :  { %1481 = vmatprep.subr.mxu0 %v1653_v5  ;;  %v1574_v28 = vpack.c.bf16 %v1389_v27, %v1388_v26  ;;  %s1336_s26 = sshll.u32 %s1605_s3, 4  ;;  %s1337_s26 = int_to_ptr.vmem [resolvable:$true] %s1336_s26 }
   0xb   :  { %s1581_s27 = scalar_lea.vmem %s1337_s26, 2048  ;;  %p1586_p1 = scmp.lt.s32.totalorder %s1337_s26, %s1337_s26 }
   0xc   :  { %p1582_p0 = scmp.ne.s32.totalorder %s1337_s26, %s1581_s27  ;;  %p1587_p2 = scmp.lt.s32.totalorder %s1581_s27, %s1581_s27 }
   0xe   :  { %p1588_p3 = por %p1587_p2, %p1586_p1 }
  0x10   :  { %p1589_p4 = pnand %p1588_p3, %p1582_p0 }
  0xdb   :  { %v1456_v11 = vpop.f32.mrb[0].mxu0 }
  0xdc   :  { %v97_v12 = vpop.f32.mrb[1].mxu0 }
  0xdd   :  { %1459 = vmatprep.mubr.msk.f32.mxu1 %vm112_vm1, %v97_v12 }
  0xde   :  { %1460 = vmatmul.mubr.msk.f32.vlgmr.msra.gmra.mrb[0].mxu1 %vm112_vm1, %v1456_v11 }
  0xdf   :  { %1553 = vmatpush3.bf16.msra.mxu1 %v1550_v8  ;;  %1466 = vmatprep.mubr.msk.f32.mxu1 %vm24_vm0, %v1642_v2 }
  0xe0   :  { %1555 = vmatprep.subr.bf16.mxu1 %v1554_v13 }
  0xe2   :  { %1467 = vmatmul.mubr.msk.f32.vlgmr.msra.gmra.mrb[2].mxu1 %vm24_vm0, %v19_v4 }
  0xe3   :  { %1557 = vmatpush3.bf16.msra.mxu1 %v1554_v13  ;;  %1478 = vmatprep.mubr.msk.f32.mxu1 %vm24_vm0, %v1642_v2 }
  0xe4   :  { %1559 = vmatprep.subr.bf16.mxu1 %v1558_v16 }
  0xe6   :  { %1479 = vmatmul.mubr.msk.f32.vlgmr.msra.gmra.mrb[4].mxu1 %vm24_vm0, %v19_v4 }
  0xe7   :  { %1561 = vmatpush3.bf16.msra.mxu1 %v1558_v16  ;;  %1490 = vmatprep.mubr.msk.f32.mxu1 %vm24_vm0, %v1642_v2 }
  0xe8   :  { %1563 = vmatprep.subr.bf16.mxu1 %v1562_v19 }
  0xea   :  { %1491 = vmatmul.mubr.msk.f32.vlgmr.msra.gmra.mrb[6].mxu1 %vm24_vm0, %v19_v4 }
  0xeb   :  { %1565 = vmatpush3.bf16.msra.mxu1 %v1562_v19  ;;  %1502 = vmatprep.mubr.msk.f32.mxu1 %vm24_vm0, %v1642_v2 }
  0xec   :  { %1567 = vmatprep.subr.bf16.mxu1 %v1566_v22 }
  0xee   :  { %1503 = vmatmul.mubr.msk.f32.vlgmr.msra.gmra.mrb[8].mxu1 %vm24_vm0, %v19_v4 }
  0xef   :  { %1569 = vmatpush3.bf16.msra.mxu1 %v1566_v22  ;;  %1514 = vmatprep.mubr.msk.f32.mxu1 %vm24_vm0, %v1642_v2 }
  0xf0   :  { %1571 = vmatprep.subr.bf16.mxu1 %v1570_v25 }
  0xf2   :  { %1515 = vmatmul.mubr.msk.f32.vlgmr.msra.gmra.mrb[10].mxu1 %vm24_vm0, %v19_v4 }
  0xf3   :  { %1573 = vmatpush3.bf16.msra.mxu1 %v1570_v25  ;;  %1526 = vmatprep.mubr.msk.f32.mxu1 %vm24_vm0, %v1642_v2 }
  0xf4   :  { %1575 = vmatprep.subr.bf16.mxu1 %v1574_v28 }
  0xf6   :  { %1527 = vmatmul.mubr.msk.f32.vlgmr.msra.gmra.mrb[12].mxu1 %vm24_vm0, %v19_v4 }
  0xf7   :  { %1577 = vmatpush3.bf16.msra.mxu1 %v1574_v28  ;;  %1538 = vmatprep.mubr.msk.f32.mxu1 %vm24_vm0, %v1642_v2 }
  0xfa   :  { %1539 = vmatmul.mubr.msk.f32.vlgmr.msra.gmra.mrb[14].mxu1 %vm24_vm0, %v19_v4 }
 0x1b1   :  { %v1461_v30 = vpop.f32.mrb[0].mxu1 }
 0x1b2   :  { %v191_v31 = vadd.f32 %v1461_v30, %v1728_v29  ;;  %v185_v32 = vpop.f32.mrb[1].mxu1 }
 0x1b3   :  { %v186_v33 = vadd.f32 %v1728_v29, %v185_v32 }
 0x1b4   :  { %196 = vst.msk [vmem:[#allocation2 + $0x8] sm:$0xff] %vm194_vm2, %v191_v31 }
 0x1b5   :  { %195 = vst.msk [vmem:[#allocation2] sm:$0xff] %vm194_vm2, %v186_v33  ;;  %v1468_v34 = vpop.f32.mrb[2].mxu1 }
 0x1b6   :  { %v266_v35 = vpop.f32.mrb[3].mxu1 }
 0x1b7   :  { %1471 = vmatprep.mubr.msk.f32.mxu0 %vm112_vm1, %v266_v35 }
 0x1b8   :  { %1472 = vmatmul.mubr.msk.f32.vlgmr.msra.gmra.mrb[2].mxu0 %vm112_vm1, %v1468_v34 }
 0x1b9   :  { %1482 = vmatpush3.msra.mxu0 %v1653_v5  ;;  %v1480_v36 = vpop.f32.mrb[4].mxu1 }
 0x1ba   :  { %v428_v37 = vpop.f32.mrb[5].mxu1  ;;  %1493 = vmatprep.subr.mxu0 %v1653_v5 }
 0x1bb   :  { %1483 = vmatprep.mubr.msk.f32.mxu0 %vm112_vm1, %v428_v37 }
 0x1bc   :  { %1484 = vmatmul.mubr.msk.f32.vlgmr.msra.gmra.mrb[4].mxu0 %vm112_vm1, %v1480_v36 }
 0x1bd   :  { %1494 = vmatpush3.msra.mxu0 %v1653_v5  ;;  %v1492_v38 = vpop.f32.mrb[6].mxu1 }
 0x1be   :  { %v590_v39 = vpop.f32.mrb[7].mxu1  ;;  %1505 = vmatprep.subr.mxu0 %v1653_v5 }
 0x1bf   :  { %1495 = vmatprep.mubr.msk.f32.mxu0 %vm112_vm1, %v590_v39 }
 0x1c0   :  { %1496 = vmatmul.mubr.msk.f32.vlgmr.msra.gmra.mrb[6].mxu0 %vm112_vm1, %v1492_v38 }
 0x1c1   :  { %1506 = vmatpush3.msra.mxu0 %v1653_v5  ;;  %v1504_v40 = vpop.f32.mrb[8].mxu1 }
 0x1c2   :  { %v752_v41 = vpop.f32.mrb[9].mxu1  ;;  %1517 = vmatprep.subr.mxu0 %v1653_v5 }
 0x1c3   :  { %1507 = vmatprep.mubr.msk.f32.mxu0 %vm112_vm1, %v752_v41 }
 0x1c4   :  { %1508 = vmatmul.mubr.msk.f32.vlgmr.msra.gmra.mrb[8].mxu0 %vm112_vm1, %v1504_v40 }
 0x1c5   :  { %1518 = vmatpush3.msra.mxu0 %v1653_v5  ;;  %v1516_v42 = vpop.f32.mrb[10].mxu1 }
 0x1c6   :  { %v914_v43 = vpop.f32.mrb[11].mxu1  ;;  %1529 = vmatprep.subr.mxu0 %v1653_v5 }
 0x1c7   :  { %1519 = vmatprep.mubr.msk.f32.mxu0 %vm112_vm1, %v914_v43 }
 0x1c8   :  { %1520 = vmatmul.mubr.msk.f32.vlgmr.msra.gmra.mrb[10].mxu0 %vm112_vm1, %v1516_v42 }
 0x1c9   :  { %1530 = vmatpush3.msra.mxu0 %v1653_v5  ;;  %v1528_v44 = vpop.f32.mrb[12].mxu1 }
 0x1ca   :  { %v1076_v45 = vpop.f32.mrb[13].mxu1  ;;  %1541 = vmatprep.subr.mxu0 %v1653_v5 }
 0x1cb   :  { %1531 = vmatprep.mubr.msk.f32.mxu0 %vm112_vm1, %v1076_v45 }
 0x1cc   :  { %1532 = vmatmul.mubr.msk.f32.vlgmr.msra.gmra.mrb[12].mxu0 %vm112_vm1, %v1528_v44 }
 0x1cd   :  { %1542 = vmatpush3.msra.mxu0 %v1653_v5  ;;  %v1540_v46 = vpop.f32.mrb[14].mxu1 }
 0x1ce   :  { %v1238_v47 = vpop.f32.mrb[15].mxu1 }
 0x1cf   :  { %1543 = vmatprep.mubr.msk.f32.mxu0 %vm112_vm1, %v1238_v47 }
 0x1d0   :  { %1544 = vmatmul.mubr.msk.f32.vlgmr.msra.gmra.mrb[14].mxu0 %vm112_vm1, %v1540_v46 }
 0x28b   :  { %v1473_v48 = vpop.f32.mrb[2].mxu0 }
 0x28c   :  { %v353_v49 = vadd.f32 %v1473_v48, %v1728_v29  ;;  %v347_v50 = vpop.f32.mrb[3].mxu0 }
 0x28d   :  { %v348_v51 = vadd.f32 %v1728_v29, %v347_v50 }
 0x28e   :  { %358 = vst.msk [vmem:[#allocation2 + $0x18] sm:$0xff] %vm194_vm2, %v353_v49 }
 0x28f   :  { %357 = vst.msk [vmem:[#allocation2 + $0x10] sm:$0xff] %vm194_vm2, %v348_v51  ;;  %v1485_v52 = vpop.f32.mrb[4].mxu0 }
 0x290   :  { %v515_v53 = vadd.f32 %v1485_v52, %v1728_v29  ;;  %v509_v54 = vpop.f32.mrb[5].mxu0 }
 0x291   :  { %v510_v55 = vadd.f32 %v1728_v29, %v509_v54 }
 0x292   :  { %520 = vst.msk [vmem:[#allocation2 + $0x28] sm:$0xff] %vm194_vm2, %v515_v53 }
 0x293   :  { %519 = vst.msk [vmem:[#allocation2 + $0x20] sm:$0xff] %vm194_vm2, %v510_v55  ;;  %v1497_v56 = vpop.f32.mrb[6].mxu0 }
 0x294   :  { %v677_v57 = vadd.f32 %v1497_v56, %v1728_v29  ;;  %v671_v58 = vpop.f32.mrb[7].mxu0 }
 0x295   :  { %v672_v59 = vadd.f32 %v1728_v29, %v671_v58 }
 0x296   :  { %682 = vst.msk [vmem:[#allocation2 + $0x38] sm:$0xff] %vm194_vm2, %v677_v57 }
 0x297   :  { %681 = vst.msk [vmem:[#allocation2 + $0x30] sm:$0xff] %vm194_vm2, %v672_v59  ;;  %v1509_v60 = vpop.f32.mrb[8].mxu0 }
 0x298   :  { %v839_v61 = vadd.f32 %v1509_v60, %v1728_v29  ;;  %v833_v62 = vpop.f32.mrb[9].mxu0 }
 0x299   :  { %v834_v63 = vadd.f32 %v1728_v29, %v833_v62 }
 0x29a   :  { %844 = vst.msk [vmem:[#allocation2 + $0x48] sm:$0xff] %vm194_vm2, %v839_v61 }
 0x29b   :  { %843 = vst.msk [vmem:[#allocation2 + $0x40] sm:$0xff] %vm194_vm2, %v834_v63  ;;  %v1521_v0 = vpop.f32.mrb[10].mxu0 }
 0x29c   :  { %v1001_v1 = vadd.f32 %v1521_v0, %v1728_v29  ;;  %v995_v2 = vpop.f32.mrb[11].mxu0 }
 0x29d   :  { %v996_v3 = vadd.f32 %v1728_v29, %v995_v2 }
 0x29e   :  { %1006 = vst.msk [vmem:[#allocation2 + $0x58] sm:$0xff] %vm194_vm2, %v1001_v1 }
 0x29f   :  { %1005 = vst.msk [vmem:[#allocation2 + $0x50] sm:$0xff] %vm194_vm2, %v996_v3  ;;  %v1533_v4 = vpop.f32.mrb[12].mxu0 }
 0x2a0   :  { %v1163_v5 = vadd.f32 %v1533_v4, %v1728_v29  ;;  %v1157_v6 = vpop.f32.mrb[13].mxu0 }
 0x2a1   :  { %v1158_v7 = vadd.f32 %v1728_v29, %v1157_v6 }
 0x2a2   :  { %1168 = vst.msk [vmem:[#allocation2 + $0x68] sm:$0xff] %vm194_vm2, %v1163_v5 }
 0x2a3   :  { %1167 = vst.msk [vmem:[#allocation2 + $0x60] sm:$0xff] %vm194_vm2, %v1158_v7  ;;  %v1545_v8 = vpop.f32.mrb[14].mxu0 }
 0x2a4   :  { %v1325_v9 = vadd.f32 %v1545_v8, %v1728_v29  ;;  %v1319_v10 = vpop.f32.mrb[15].mxu0 }
 0x2a5   :  { %v1320_v11 = vadd.f32 %v1728_v29, %v1319_v10 }
 0x2a6   :  { %1330 = vst.msk [vmem:[#allocation2 + $0x78] sm:$0xff] %vm194_vm2, %v1325_v9 }
 0x2a7   :  { %1329 = vst.msk [vmem:[#allocation2 + $0x70] sm:$0xff] %vm194_vm2, %v1320_v11 }
 0x2a8   :  { %1592 = shalt.err (!%p1589_p4)
}
 0x2a9   :  { %s1593_s2 = scalar_lea.hbm %s1803_s4, 2048 }
 0x2aa   :  { %p1594_p5 = scmp.ne.s32.totalorder %s1803_s4, %s1593_s2  ;;  %p1597_p6 = scmp.lt.u32.totalorder %s1593_s2, %s1803_s4 }
 0x2ac   :  { %p1599_p7 = pnand %p1597_p6, %p1594_p5 }
 0x2ae   :  { %1602 = shalt.err (!%p1599_p7)
}
 0x2af   :  { %s1606_s7 = smov 128   ;;  %s1607_s8 = smov 8  }
 0x2b0   :  { %1342 = dma.vmem_to_hbm [thread:$0]  %s1337_s26, 2048, %s1803_s4, [#allocation3], %s1606_s7, %s1606_s7, %s1607_s8  }
 0x2b1   :  { %1603 = dma.done.wait [#allocation3], 2048  }
 0x2b2   :  { %1604 = vsyncadd [#allocation3], 4294965248 }
 0x2b3   :  { %1346 = vsyncpa [#allocation3], 1 }

</bundles_post_ra>
